<compile_context>
chip_gen: v5e
topology: v5e:2x2
jax: 0.10.0
libtpu: 0.0.40
codegen_flags: <defaults>
</compile_context>

<pallas_src>
import jax
import jax.numpy as jnp
from jax.experimental import pallas as pl
from jax.experimental.pallas import tpu as pltpu

IN_FEATURES = 784
H1, H2, H3 = 256, 128, 64
H3_PADDED = 128           # pad the 64-wide hidden dim to a full 128-lane tile
NUM_CLASSES = 10
CLASSES_PADDED = 128      # lane-dense output (unmasked vst)
NEG_BIG = -1.0e30         # padded-logit bias (kept in f32); exp() underflows to 0


def mlp_kernel(x_ref, w1_ref, b1_ref, w2_ref, b2_ref, w3_ref, b3_ref,
               w4_ref, b4_ref, o_ref):
    cdt = w1_ref.dtype  # MXU-operand dtype (bf16 by default, f32 for exact path)

    # In-kernel cast of the x tile (no wrapper-side copy of x).
    x = x_ref[...].astype(cdt)

    # Layer 1: 784 -> 256, ReLU.  f32 accumulation on the MXU.
    h = jnp.dot(x, w1_ref[...], preferred_element_type=jnp.float32) + b1_ref[...]
    h = jnp.maximum(h, 0.0)

    # Layer 2: 256 -> 128, ReLU.
    h = jnp.dot(h.astype(cdt), w2_ref[...],
                preferred_element_type=jnp.float32) + b2_ref[...]
    h = jnp.maximum(h, 0.0)

    # Layer 3: 128 -> 128 (64 real units + 64 zero-padded units), ReLU.
    h = jnp.dot(h.astype(cdt), w3_ref[...],
                preferred_element_type=jnp.float32) + b3_ref[...]
    h = jnp.maximum(h, 0.0)

    # Layer 4: 128 -> 128 (10 real classes + 118 lanes biased to -1e30).
    logits = jnp.dot(h.astype(cdt), w4_ref[...],
                     preferred_element_type=jnp.float32) + b4_ref[...]

    # log_softmax over the padded class axis; padded lanes contribute exp()==0
    # to the sum, so the real-class log-probs are exact.
    m = jnp.max(logits, axis=-1, keepdims=True)
    shifted = logits - m
    lse = jnp.log(jnp.sum(jnp.exp(shifted), axis=-1, keepdims=True))
    o_ref[...] = (shifted - lse).astype(o_ref.dtype)


def _cdiv(a, b):
    return -(-a // b)


def _round_up(n, m):
    return ((n + m - 1) // m) * m


def _choose_block_m(batch, cap):
    if batch <= 8:
        # Single tile; a block dim equal to the full batch is always legal.
        return batch
    # >= 2 grid steps so both v7x TensorCores get work under "parallel"
    # semantics; tail waste stays below 8 rows of compute (no HBM waste).
    n_steps = max(2, _cdiv(batch, cap))
    return min(cap, _round_up(_cdiv(batch, n_steps), 8))


def my_awesome_model_forward(x, params, *, block_m=None,
                             compute_dtype=jnp.bfloat16):
    """x: (B, 1, 28, 28) f32 (NCHW).  Returns (B, 10) log-probabilities (f32)."""
    B = x.shape[0]
    x_flat = x.reshape(B, -1)  # == torch x.view(x.shape[0], -1); free bitcast
    assert x_flat.shape[1] == IN_FEATURES

    cap = 1024 if compute_dtype == jnp.bfloat16 else 512
    if block_m is None:
        block_m = _choose_block_m(B, cap)
    grid = (_cdiv(B, block_m),)

    (w1, b1), (w2, b2), (w3, b3), (w4, b4) = params

    # --- tiny weight-side padding / casting (x itself is untouched) ----------
    w1c = w1.astype(compute_dtype)
    w2c = w2.astype(compute_dtype)
    w3c = jnp.pad(w3, ((0, 0), (0, H3_PADDED - H3))).astype(compute_dtype)
    w4c = jnp.pad(w4, ((0, H3_PADDED - H3),
                       (0, CLASSES_PADDED - NUM_CLASSES))).astype(compute_dtype)

    b1f = b1.astype(jnp.float32)
    b2f = b2.astype(jnp.float32)
    b3f = jnp.pad(b3, ((0, 0), (0, H3_PADDED - H3))).astype(jnp.float32)
    # Keep b4 in f32 so -1e30 stays finite (bf16 would round it to -inf).
    b4f = jnp.concatenate(
        [b4.astype(jnp.float32),
         jnp.full((1, CLASSES_PADDED - NUM_CLASSES), NEG_BIG, jnp.float32)],
        axis=1)

    def resident(arr):
        # Whole array resident in VMEM for every batch tile.
        return pl.BlockSpec(arr.shape, lambda i: (0, 0))

    itemsize = jnp.dtype(compute_dtype).itemsize
    mm_sizes = (IN_FEATURES * H1 + H1 * H2 + H2 * H3_PADDED
                + H3_PADDED * CLASSES_PADDED)
    cost = pl.CostEstimate(
        flops=2 * B * mm_sizes,
        transcendentals=B * CLASSES_PADDED,
        bytes_accessed=(B * IN_FEATURES * 4               # x (f32 in HBM)
                        + mm_sizes * itemsize             # weights
                        + (H1 + H2 + H3_PADDED + CLASSES_PADDED) * 4  # biases
                        + B * CLASSES_PADDED * 4))        # output

    out_padded = pl.pallas_call(
        mlp_kernel,
        out_shape=jax.ShapeDtypeStruct((B, CLASSES_PADDED), jnp.float32),
        grid_spec=pltpu.PrefetchScalarGridSpec(
            num_scalar_prefetch=0,
            grid=grid,
            in_specs=[
                pl.BlockSpec((block_m, IN_FEATURES), lambda i: (i, 0)),  # x tile
                resident(w1c), resident(b1f),
                resident(w2c), resident(b2f),
                resident(w3c), resident(b3f),
                resident(w4c), resident(b4f),
            ],
            out_specs=pl.BlockSpec((block_m, CLASSES_PADDED), lambda i: (i, 0)),
        ),
        compiler_params=pltpu.CompilerParams(
            dimension_semantics=("parallel",),
            vmem_limit_bytes=32 * 1024 * 1024,
        ),
        cost_estimate=cost,
    )(x_flat, w1c, b1f, w2c, b2f, w3c, b3f, w4c, b4f)

    return out_padded[:, :NUM_CLASSES]


def init_params(key):
    """Deterministic init mimicking nn.Linear's U(-1/sqrt(fan_in), 1/sqrt(fan_in)).

    Weights stored as (in_features, out_features); biases as (1, out)."""
    dims = [(784, 256), (256, 128), (128, 64), (64, 10)]
    params = []
    for (fan_in, fan_out) in dims:
        key, kw, kb = jax.random.split(key, 3)
        bound = 1.0 / jnp.sqrt(jnp.float32(fan_in))
        w = jax.random.uniform(kw, (fan_in, fan_out), jnp.float32, -bound, bound)
        b = jax.random.uniform(kb, (1, fan_out), jnp.float32, -bound, bound)
        params.append((w, b))
    return params


def reference_forward(x, params):
    """Pure-JAX reference (matches the PyTorch forward) for correctness check."""
    h = x.reshape(x.shape[0], -1)
    (w1, b1), (w2, b2), (w3, b3), (w4, b4) = params
    h = jnp.maximum(h @ w1 + b1, 0.0)
    h = jnp.maximum(h @ w2 + b2, 0.0)
    h = jnp.maximum(h @ w3 + b3, 0.0)
    logits = h @ w4 + b4
    return jax.nn.log_softmax(logits, axis=1)


if __name__ == "__main__":
    key = jax.random.PRNGKey(0)
    key, kx1, kx2 = jax.random.split(key, 3)
    params = init_params(key)

    # 1) Small MNIST-like batch, exact f32 compute path, strict tolerance.
    x_small = jax.random.normal(kx1, (8, 1, 28, 28), dtype=jnp.float32)
    ref_small = reference_forward(x_small, params)
    out_f32 = jax.block_until_ready(
        my_awesome_model_forward(x_small, params, compute_dtype=jnp.float32))
    assert out_f32.shape == (8, 10)
    assert jnp.allclose(out_f32, ref_small, atol=1e-5, rtol=1e-5), "f32 mismatch"

    # 2) Default bf16 MXU path (f32 accumulation) on the same batch.
    out_bf16 = jax.block_until_ready(my_awesome_model_forward(x_small, params))
    assert out_bf16.shape == (8, 10)
    assert bool(jnp.all(jnp.isfinite(out_bf16)))
    assert jnp.allclose(out_bf16, ref_small, atol=1e-1), "bf16 path diverged"

    # 3) Non-divisible batch: exercises the 2-step parallel grid and the
    #    partial (masked) last block.  Strict check on the f32 path, loose on
    #    the default bf16 path.
    x_mid = jax.random.normal(kx2, (200, 1, 28, 28), dtype=jnp.float32)
    ref_mid = reference_forward(x_mid, params)
    out_mid_f32 = jax.block_until_ready(
        my_awesome_model_forward(x_mid, params, compute_dtype=jnp.float32))
    assert out_mid_f32.shape == (200, 10)
    assert jnp.allclose(out_mid_f32, ref_mid, atol=1e-5, rtol=1e-5), "tiled mismatch"

    out_mid_bf16 = jax.block_until_ready(my_awesome_model_forward(x_mid, params))
    assert jnp.allclose(out_mid_bf16, ref_mid, atol=1e-1), "tiled bf16 diverged"

    print("KERNEL_OK")
</pallas_src>

<mosaic_0001>
module attributes {stable_mosaic.version = 11 : i64} {
  func.func @mlp_kernel(%arg0: i32, %arg1: memref<8x784xf32, #tpu.memory_space<vmem>>, %arg2: memref<784x256xf32, #tpu.memory_space<vmem>>, %arg3: memref<1x256xf32, #tpu.memory_space<vmem>>, %arg4: memref<256x128xf32, #tpu.memory_space<vmem>>, %arg5: memref<1x128xf32, #tpu.memory_space<vmem>>, %arg6: memref<128x128xf32, #tpu.memory_space<vmem>>, %arg7: memref<1x128xf32, #tpu.memory_space<vmem>>, %arg8: memref<128x128xf32, #tpu.memory_space<vmem>>, %arg9: memref<1x128xf32, #tpu.memory_space<vmem>>, %arg10: memref<8x128xf32, #tpu.memory_space<vmem>>) attributes {dimension_semantics = [#tpu.dimension_semantics<parallel>], iteration_bounds = array<i64: 1>, scalar_prefetch = 0 : i64, scratch_operands = 0 : i64, tpu.core_type = #tpu.core_type<tc>, window_params = [{transform_indices = @transform_0, window_bounds = array<i64: 8, 784>}, {pipeline_mode = #tpu.pipeline_mode<synchronous>, transform_indices = @transform_1, window_bounds = array<i64: 784, 256>}, {pipeline_mode = #tpu.pipeline_mode<synchronous>, transform_indices = @transform_2, window_bounds = array<i64: 1, 256>}, {pipeline_mode = #tpu.pipeline_mode<synchronous>, transform_indices = @transform_3, window_bounds = array<i64: 256, 128>}, {pipeline_mode = #tpu.pipeline_mode<synchronous>, transform_indices = @transform_4, window_bounds = array<i64: 1, 128>}, {pipeline_mode = #tpu.pipeline_mode<synchronous>, transform_indices = @transform_5, window_bounds = array<i64: 128, 128>}, {pipeline_mode = #tpu.pipeline_mode<synchronous>, transform_indices = @transform_6, window_bounds = array<i64: 1, 128>}, {pipeline_mode = #tpu.pipeline_mode<synchronous>, transform_indices = @transform_7, window_bounds = array<i64: 128, 128>}, {pipeline_mode = #tpu.pipeline_mode<synchronous>, transform_indices = @transform_8, window_bounds = array<i64: 1, 128>}, {transform_indices = @transform_9, window_bounds = array<i64: 8, 128>}]} {
    %c0 = arith.constant 0 : index
    %c0_0 = arith.constant 0 : index
    %0 = vector.load %arg1[%c0, %c0_0] : memref<8x784xf32, #tpu.memory_space<vmem>>, vector<8x784xf32>
    %c0_1 = arith.constant 0 : index
    %c0_2 = arith.constant 0 : index
    %1 = vector.load %arg2[%c0_1, %c0_2] : memref<784x256xf32, #tpu.memory_space<vmem>>, vector<784x256xf32>
    %cst = arith.constant dense<0.000000e+00> : vector<8x256xf32>
    %2 = tpu.matmul %0, %1, %cst {dimension_numbers = #tpu.dot_dimension_numbers<[1], [0], [0], [1], [0, 0, 1, 1], [], []>} : vector<8x784xf32>, vector<784x256xf32>, vector<8x256xf32> -> vector<8x256xf32>
    %c0_3 = arith.constant 0 : index
    %c0_4 = arith.constant 0 : index
    %3 = vector.load %arg3[%c0_3, %c0_4] : memref<1x256xf32, #tpu.memory_space<vmem>>, vector<1x256xf32>
    %4 = vector.broadcast %3 : vector<1x256xf32> to vector<8x256xf32>
    %5 = arith.addf %2, %4 : vector<8x256xf32>
    %cst_5 = arith.constant 0.000000e+00 : f32
    %6 = vector.broadcast %cst_5 : f32 to vector<8x256xf32>
    %7 = arith.maximumf %5, %6 : vector<8x256xf32>
    %c0_6 = arith.constant 0 : index
    %c0_7 = arith.constant 0 : index
    %8 = vector.load %arg4[%c0_6, %c0_7] : memref<256x128xf32, #tpu.memory_space<vmem>>, vector<256x128xf32>
    %cst_8 = arith.constant dense<0.000000e+00> : vector<8x128xf32>
    %9 = tpu.matmul %7, %8, %cst_8 {dimension_numbers = #tpu.dot_dimension_numbers<[1], [0], [0], [1], [0, 0, 1, 1], [], []>} : vector<8x256xf32>, vector<256x128xf32>, vector<8x128xf32> -> vector<8x128xf32>
    %c0_9 = arith.constant 0 : index
    %c0_10 = arith.constant 0 : index
    %10 = vector.load %arg5[%c0_9, %c0_10] : memref<1x128xf32, #tpu.memory_space<vmem>>, vector<1x128xf32>
    %11 = vector.broadcast %10 : vector<1x128xf32> to vector<8x128xf32>
    %12 = arith.addf %9, %11 : vector<8x128xf32>
    %cst_11 = arith.constant 0.000000e+00 : f32
    %13 = vector.broadcast %cst_11 : f32 to vector<8x128xf32>
    %14 = arith.maximumf %12, %13 : vector<8x128xf32>
    %c0_12 = arith.constant 0 : index
    %c0_13 = arith.constant 0 : index
    %15 = vector.load %arg6[%c0_12, %c0_13] : memref<128x128xf32, #tpu.memory_space<vmem>>, vector<128x128xf32>
    %cst_14 = arith.constant dense<0.000000e+00> : vector<8x128xf32>
    %16 = tpu.matmul %14, %15, %cst_14 {dimension_numbers = #tpu.dot_dimension_numbers<[1], [0], [0], [1], [0, 0, 1, 1], [], []>} : vector<8x128xf32>, vector<128x128xf32>, vector<8x128xf32> -> vector<8x128xf32>
    %c0_15 = arith.constant 0 : index
    %c0_16 = arith.constant 0 : index
    %17 = vector.load %arg7[%c0_15, %c0_16] : memref<1x128xf32, #tpu.memory_space<vmem>>, vector<1x128xf32>
    %18 = vector.broadcast %17 : vector<1x128xf32> to vector<8x128xf32>
    %19 = arith.addf %16, %18 : vector<8x128xf32>
    %cst_17 = arith.constant 0.000000e+00 : f32
    %20 = vector.broadcast %cst_17 : f32 to vector<8x128xf32>
    %21 = arith.maximumf %19, %20 : vector<8x128xf32>
    %c0_18 = arith.constant 0 : index
    %c0_19 = arith.constant 0 : index
    %22 = vector.load %arg8[%c0_18, %c0_19] : memref<128x128xf32, #tpu.memory_space<vmem>>, vector<128x128xf32>
    %cst_20 = arith.constant dense<0.000000e+00> : vector<8x128xf32>
    %23 = tpu.matmul %21, %22, %cst_20 {dimension_numbers = #tpu.dot_dimension_numbers<[1], [0], [0], [1], [0, 0, 1, 1], [], []>} : vector<8x128xf32>, vector<128x128xf32>, vector<8x128xf32> -> vector<8x128xf32>
    %c0_21 = arith.constant 0 : index
    %c0_22 = arith.constant 0 : index
    %24 = vector.load %arg9[%c0_21, %c0_22] : memref<1x128xf32, #tpu.memory_space<vmem>>, vector<1x128xf32>
    %25 = vector.broadcast %24 : vector<1x128xf32> to vector<8x128xf32>
    %26 = arith.addf %23, %25 : vector<8x128xf32>
    %cst_23 = arith.constant dense<0xFF800000> : vector<8xf32>
    %27 = vector.multi_reduction <maximumf>, %26, %cst_23 [1] : vector<8x128xf32> to vector<8xf32>
    %28 = vector.shape_cast %27 : vector<8xf32> to vector<8x1xf32>
    %29 = vector.broadcast %28 : vector<8x1xf32> to vector<8x128xf32>
    %30 = arith.subf %26, %29 : vector<8x128xf32>
    %31 = math.exp %30 : vector<8x128xf32>
    %cst_24 = arith.constant dense<0.000000e+00> : vector<8xf32>
    %32 = vector.multi_reduction <add>, %31, %cst_24 [1] : vector<8x128xf32> to vector<8xf32>
    %33 = vector.shape_cast %32 : vector<8xf32> to vector<8x1xf32>
    %34 = math.log %33 : vector<8x1xf32>
    %35 = vector.broadcast %34 : vector<8x1xf32> to vector<8x128xf32>
    %36 = arith.subf %30, %35 : vector<8x128xf32>
    %c0_25 = arith.constant 0 : index
    %c0_26 = arith.constant 0 : index
    %37 = vector.load %arg10[%c0_25, %c0_26] : memref<8x128xf32, #tpu.memory_space<vmem>>, vector<8x128xf32>
    tpu.vector_store %arg10[%c0_25, %c0_26], %36 {strides = array<i32>} : memref<8x128xf32, #tpu.memory_space<vmem>>, vector<8x128xf32>,
    return
  }
  func.func @transform_0(%arg0: i32) -> (i32, i32) {
    %c0_i32 = arith.constant 0 : i32
    %c0_i32_0 = arith.constant 0 : i32
    return %arg0, %c0_i32 : i32, i32
  }
  func.func @transform_1(%arg0: i32) -> (i32, i32) {
    %c0_i32 = arith.constant 0 : i32
    %c0_i32_0 = arith.constant 0 : i32
    %c0_i32_1 = arith.constant 0 : i32
    return %c0_i32, %c0_i32_0 : i32, i32
  }
  func.func @transform_2(%arg0: i32) -> (i32, i32) {
    %c0_i32 = arith.constant 0 : i32
    %c0_i32_0 = arith.constant 0 : i32
    %c0_i32_1 = arith.constant 0 : i32
    return %c0_i32, %c0_i32_0 : i32, i32
  }
  func.func @transform_3(%arg0: i32) -> (i32, i32) {
    %c0_i32 = arith.constant 0 : i32
    %c0_i32_0 = arith.constant 0 : i32
    %c0_i32_1 = arith.constant 0 : i32
    return %c0_i32, %c0_i32_0 : i32, i32
  }
  func.func @transform_4(%arg0: i32) -> (i32, i32) {
    %c0_i32 = arith.constant 0 : i32
    %c0_i32_0 = arith.constant 0 : i32
    %c0_i32_1 = arith.constant 0 : i32
    return %c0_i32, %c0_i32_0 : i32, i32
  }
  func.func @transform_5(%arg0: i32) -> (i32, i32) {
    %c0_i32 = arith.constant 0 : i32
    %c0_i32_0 = arith.constant 0 : i32
    %c0_i32_1 = arith.constant 0 : i32
    return %c0_i32, %c0_i32_0 : i32, i32
  }
  func.func @transform_6(%arg0: i32) -> (i32, i32) {
    %c0_i32 = arith.constant 0 : i32
    %c0_i32_0 = arith.constant 0 : i32
    %c0_i32_1 = arith.constant 0 : i32
    return %c0_i32, %c0_i32_0 : i32, i32
  }
  func.func @transform_7(%arg0: i32) -> (i32, i32) {
    %c0_i32 = arith.constant 0 : i32
    %c0_i32_0 = arith.constant 0 : i32
    %c0_i32_1 = arith.constant 0 : i32
    return %c0_i32, %c0_i32_0 : i32, i32
  }
  func.func @transform_8(%arg0: i32) -> (i32, i32) {
    %c0_i32 = arith.constant 0 : i32
    %c0_i32_0 = arith.constant 0 : i32
    %c0_i32_1 = arith.constant 0 : i32
    return %c0_i32, %c0_i32_0 : i32, i32
  }
  func.func @transform_9(%arg0: i32) -> (i32, i32) {
    %c0_i32 = arith.constant 0 : i32
    %c0_i32_0 = arith.constant 0 : i32
    return %arg0, %c0_i32 : i32, i32
  }
}

</mosaic_0001>

<bundles_post_ra>
// kernel: tpu_custom_call.1
= control target key start
LH: loop header
LB: loop body
LE: loop exit
PB: predicated region body
PF: predicated region fallthrough
CT: control target
= control target key end

     0   :  { %14 = vsyncpa [#allocation3], 0  ;;  %s1126_s0 = inlined_call_operand.hbm [shape: f32[8,784], index: 0, kind: input, shape index: {}]   ;;  %s1127_s1 = inlined_call_operand.hbm [shape: f32[784,256], index: 1, kind: input, shape index: {}]   ;;  %s1128_s2 = inlined_call_operand.hbm [shape: f32[1,256], index: 2, kind: input, shape index: {}]   ;;  %s1129_s3 = inlined_call_operand.hbm [shape: f32[256,128], index: 3, kind: input, shape index: {}]   ;;  %s1130_s4 = inlined_call_operand.vmem [shape: f32[1,128], index: 4, kind: input, shape index: {}]   ;;  %s1131_s5 = inlined_call_operand.hbm [shape: f32[128,128], index: 5, kind: input, shape index: {}]   ;;  %s1132_s6 = inlined_call_operand.vmem [shape: f32[1,128], index: 6, kind: input, shape index: {}]   ;;  %s1133_s7 = inlined_call_operand.hbm [shape: f32[128,128], index: 7, kind: input, shape index: {}]   ;;  %s1134_s8 = inlined_call_operand.vmem [shape: f32[1,128], index: 8, kind: input, shape index: {}]   ;;  %s1135_s9 = inlined_call_operand.hbm [shape: f32[8,128], index: 9, kind: output, shape index: {}]  }
   0x1   :  { %15 = vsyncpa [#allocation6], 0 }
   0x2   :  { %16 = vsyncpa [#allocation9], 0 }
   0x3   :  { %17 = vsyncpa [#allocation12], 0  ;;  %s34_s11 = sshll.u32 %s1127_s1, 4  ;;  %s35_s11 = int_to_ptr.hbm [resolvable:$true] %s34_s11 }
   0x4   :  { %18 = vsyncpa [#allocation4], 0  ;;  %s1005_s12 = smov [#allocation5]   ;;  %s58_s16 = sshll.u32 %s1129_s3, 4  ;;  %s59_s16 = int_to_ptr.hbm [resolvable:$true] %s58_s16 }
   0x5   :  { %s36_s13 = sshll.u32 %s1005_s12, 4  ;;  %s1006_s17 = smov 256   ;;  %s37_s13 = int_to_ptr.vmem [resolvable:$true] %s36_s13 }
   0x6   :  { %s1007_s18 = smov 16   ;;  %s1008_s19 = smov [#allocation8]  }
   0x7   :  { %42 = dma.hbm_to_vmem [thread:$0]  %s35_s11, 25088, %s37_s13, [#allocation6], %s1006_s17, %s1006_s17, %s1007_s18  }
   0x8   :  { %s60_s20 = sshll.u32 %s1008_s19, 4  ;;  %s1009_s21 = smov 128   ;;  %s61_s20 = int_to_ptr.vmem [resolvable:$true] %s60_s20 }
   0x9   :  { %s1010_s22 = smov 8   ;;  %s24_s24 = sshll.u32 %s1126_s0, 4  ;;  %s25_s24 = int_to_ptr.hbm [resolvable:$true] %s24_s24 }
   0xa   :  { %66 = dma.hbm_to_vmem [thread:$0]  %s59_s16, 4096, %s61_s20, [#allocation9], %s1009_s21, %s1009_s21, %s1010_s22  }
   0xb   :  { %s1011_s25 = smov [#allocation2]   ;;  %s48_s28 = sshll.u32 %s1128_s2, 4  ;;  %s49_s28 = int_to_ptr.hbm [resolvable:$true] %s48_s28 }
   0xc   :  { %s26_s26 = sshll.u32 %s1011_s25, 4  ;;  %s1012_s29 = smov [#allocation7]   ;;  %s27_s26 = int_to_ptr.vmem [resolvable:$true] %s26_s26 }
   0xd   :  { %29 = dma.hbm_to_vmem [thread:$0]  %s25_s24, 896, %s27_s26, [#allocation3]  }
   0xe   :  { %s50_s30 = sshll.u32 %s1012_s29, 4  ;;  %s73_s12 = sshll.u32 %s1131_s5, 4  ;;  %s51_s30 = int_to_ptr.vmem [resolvable:$true] %s50_s30  ;;  %s74_s12 = int_to_ptr.hbm [resolvable:$true] %s73_s12 }
   0xf   :  { %53 = dma.hbm_to_vmem [thread:$0]  %s49_s28, 32, %s51_s30, [#allocation6]  }
  0x10   :  { %s88_s14 = sshll.u32 %s1133_s7, 4  ;;  %s1013_s15 = smov [#allocation10]   ;;  %s89_s14 = int_to_ptr.hbm [resolvable:$true] %s88_s14 }
  0x11   :  { %s75_s16 = sshll.u32 %s1013_s15, 4  ;;  %s1014_s2 = smov [#allocation11]   ;;  %s76_s16 = int_to_ptr.vmem [resolvable:$true] %s75_s16 }
  0x12   :  { %81 = dma.hbm_to_vmem [thread:$0]  %s74_s12, 2048, %s76_s16, [#allocation9], %s1009_s21, %s1009_s21, %s1010_s22  }
  0x13   :  { %s90_s17 = sshll.u32 %s1014_s2, 4  ;;  %s91_s17 = int_to_ptr.vmem [resolvable:$true] %s90_s17 }
  0x14   :  { %96 = dma.hbm_to_vmem [thread:$0]  %s89_s14, 2048, %s91_s17, [#allocation12], %s1009_s21, %s1009_s21, %s1010_s22  }
  0x15   :  { %995 = dma.done.wait [#allocation3], 896  }
  0x16   :  { %996 = vsyncadd [#allocation3], 4294966400 }
  0x17   :  { %997 = dma.done.wait [#allocation6], 25120  }
  0x18   :  { %998 = vsyncadd [#allocation6], 4294942176 }
  0x19   :  { %999 = dma.done.wait [#allocation9], 6144  }
  0x1a   :  { %1000 = vsyncadd [#allocation9], 4294961152 }
  0x1b   :  { %1001 = dma.done.wait [#allocation12], 2048  }
  0x1c   :  { %1002 = vsyncadd [#allocation12], 4294965248  ;;  %v160_v0 = vld [vmem:[#allocation5 + $0xf0] sm:$0xff]  ;;  %v158_v3 = vld [vmem:[#allocation5 + $0xe0] sm:$0xff]  ;;  %vm332_vm0 = vcmask 130048   ;;  %s794_s23 = sshll.u32 %s1135_s9, 4  ;;  %s795_s23 = int_to_ptr.hbm [resolvable:$true] %s794_s23 }
  0x1d   :  { %v224_v1 = vld [vmem:[#allocation5 + $0x2f0] sm:$0xff]  ;;  %336 = vmatpush.msra.mxu0 %v160_v0  ;;  %v222_v5 = vld [vmem:[#allocation5 + $0x2e0] sm:$0xff] }
  0x1e   :  { %v256_v2 = vld [vmem:[#allocation5 + $0x3f0] sm:$0xff]  ;;  %376 = vmatpush.msra.mxu2 %v224_v1  ;;  %v254_v6 = vld [vmem:[#allocation5 + $0x3e0] sm:$0xff] }
  0x1f   :  { %v192_v4 = vld [vmem:[#allocation5 + $0x1f0] sm:$0xff]  ;;  %396 = vmatpush.msra.mxu3 %v256_v2  ;;  %v190_v8 = vld [vmem:[#allocation5 + $0x1e0] sm:$0xff]  ;;  %337 = vmatpush.msra.mxu0 %v158_v3  ;;  %v161_v2 = vld [vmem:[#allocation5 + $0xf8] sm:$0xff] }
  0x20   :  { %356 = vmatpush.msra.mxu1 %v192_v4  ;;  %v156_v7 = vld [vmem:[#allocation5 + $0xd0] sm:$0xff]  ;;  %377 = vmatpush.msra.mxu2 %v222_v5  ;;  %v154_v11 = vld [vmem:[#allocation5 + $0xc0] sm:$0xff] }
  0x21   :  { %v220_v9 = vld [vmem:[#allocation5 + $0x2d0] sm:$0xff]  ;;  %397 = vmatpush.msra.mxu3 %v254_v6  ;;  %v218_v13 = vld [vmem:[#allocation5 + $0x2c0] sm:$0xff]  ;;  %338 = vmatpush.msra.mxu0 %v156_v7  ;;  %v1084_v6 = vld [vmem:[#allocation2 + $0x10] sm:$0xff] }
  0x22   :  { %v252_v10 = vld [vmem:[#allocation5 + $0x3d0] sm:$0xff]  ;;  %357 = vmatpush.msra.mxu1 %v190_v8  ;;  %378 = vmatpush.msra.mxu2 %v220_v9  ;;  %v250_v14 = vld [vmem:[#allocation5 + $0x3c0] sm:$0xff]  ;;  %v159_v7 = vld [vmem:[#allocation5 + $0xe8] sm:$0xff] }
  0x23   :  { %v188_v12 = vld [vmem:[#allocation5 + $0x1d0] sm:$0xff]  ;;  %v186_v15 = vld [vmem:[#allocation5 + $0x1c0] sm:$0xff]  ;;  %398 = vmatpush.msra.mxu3 %v252_v10  ;;  %339 = vmatpush.msra.mxu0 %v154_v11  ;;  %v193_v8 = vld [vmem:[#allocation5 + $0x1f8] sm:$0xff] }
  0x24   :  { %358 = vmatpush.msra.mxu1 %v188_v12  ;;  %v152_v16 = vld [vmem:[#allocation5 + $0xb0] sm:$0xff]  ;;  %379 = vmatpush.msra.mxu2 %v218_v13  ;;  %v150_v20 = vld [vmem:[#allocation5 + $0xa0] sm:$0xff]  ;;  %v1086_v11 = vld [vmem:[#allocation2] sm:$0xff] }
  0x25   :  { %v216_v17 = vld [vmem:[#allocation5 + $0x2b0] sm:$0xff]  ;;  %399 = vmatpush.msra.mxu3 %v250_v14  ;;  %v214_v21 = vld [vmem:[#allocation5 + $0x2a0] sm:$0xff]  ;;  %340 = vmatpush.msra.mxu0 %v152_v16  ;;  %v191_v13 = vld [vmem:[#allocation5 + $0x1e8] sm:$0xff] }
  0x26   :  { %v248_v18 = vld [vmem:[#allocation5 + $0x3b0] sm:$0xff]  ;;  %359 = vmatpush.msra.mxu1 %v186_v15  ;;  %380 = vmatpush.msra.mxu2 %v216_v17  ;;  %v246_v22 = vld [vmem:[#allocation5 + $0x3a0] sm:$0xff]  ;;  %v157_v14 = vld [vmem:[#allocation5 + $0xd8] sm:$0xff] }
  0x27   :  { %v184_v19 = vld [vmem:[#allocation5 + $0x1b0] sm:$0xff]  ;;  %v182_v23 = vld [vmem:[#allocation5 + $0x1a0] sm:$0xff]  ;;  %400 = vmatpush.msra.mxu3 %v248_v18  ;;  %341 = vmatpush.msra.mxu0 %v150_v20  ;;  %v189_v17 = vld [vmem:[#allocation5 + $0x1d8] sm:$0xff] }
  0x28   :  { %360 = vmatpush.msra.mxu1 %v184_v19  ;;  %v148_v24 = vld [vmem:[#allocation5 + $0x90] sm:$0xff]  ;;  %381 = vmatpush.msra.mxu2 %v214_v21  ;;  %v146_v28 = vld [vmem:[#allocation5 + $0x80] sm:$0xff]  ;;  %v155_v19 = vld [vmem:[#allocation5 + $0xc8] sm:$0xff] }
  0x29   :  { %v212_v25 = vld [vmem:[#allocation5 + $0x290] sm:$0xff]  ;;  %401 = vmatpush.msra.mxu3 %v246_v22  ;;  %v210_v29 = vld [vmem:[#allocation5 + $0x280] sm:$0xff]  ;;  %342 = vmatpush.msra.mxu0 %v148_v24  ;;  %v153_v22 = vld [vmem:[#allocation5 + $0xb8] sm:$0xff] }
  0x2a   :  { %v244_v26 = vld [vmem:[#allocation5 + $0x390] sm:$0xff]  ;;  %361 = vmatpush.msra.mxu1 %v182_v23  ;;  %382 = vmatpush.msra.mxu2 %v212_v25  ;;  %v242_v30 = vld [vmem:[#allocation5 + $0x380] sm:$0xff]  ;;  %v187_v23 = vld [vmem:[#allocation5 + $0x1c8] sm:$0xff] }
  0x2b   :  { %v180_v27 = vld [vmem:[#allocation5 + $0x190] sm:$0xff]  ;;  %v178_v31 = vld [vmem:[#allocation5 + $0x180] sm:$0xff]  ;;  %402 = vmatpush.msra.mxu3 %v244_v26  ;;  %343 = vmatpush.msra.mxu0 %v146_v28  ;;  %v151_v26 = vld [vmem:[#allocation5 + $0xa8] sm:$0xff] }
  0x2c   :  { %362 = vmatpush.msra.mxu1 %v180_v27  ;;  %v144_v32 = vld [vmem:[#allocation5 + $0x70] sm:$0xff]  ;;  %383 = vmatpush.msra.mxu2 %v210_v29  ;;  %v142_v36 = vld [vmem:[#allocation5 + $0x60] sm:$0xff]  ;;  %v185_v27 = vld [vmem:[#allocation5 + $0x1b8] sm:$0xff] }
  0x2d   :  { %v208_v33 = vld [vmem:[#allocation5 + $0x270] sm:$0xff]  ;;  %403 = vmatpush.msra.mxu3 %v242_v30  ;;  %v206_v37 = vld [vmem:[#allocation5 + $0x260] sm:$0xff]  ;;  %344 = vmatpush.msra.mxu0 %v144_v32  ;;  %v149_v30 = vld [vmem:[#allocation5 + $0x98] sm:$0xff] }
  0x2e   :  { %v240_v34 = vld [vmem:[#allocation5 + $0x370] sm:$0xff]  ;;  %363 = vmatpush.msra.mxu1 %v178_v31  ;;  %384 = vmatpush.msra.mxu2 %v208_v33  ;;  %v238_v38 = vld [vmem:[#allocation5 + $0x360] sm:$0xff]  ;;  %v183_v31 = vld [vmem:[#allocation5 + $0x1a8] sm:$0xff] }
  0x2f   :  { %v176_v35 = vld [vmem:[#allocation5 + $0x170] sm:$0xff]  ;;  %v174_v39 = vld [vmem:[#allocation5 + $0x160] sm:$0xff]  ;;  %404 = vmatpush.msra.mxu3 %v240_v34  ;;  %345 = vmatpush.msra.mxu0 %v142_v36  ;;  %v147_v34 = vld [vmem:[#allocation5 + $0x88] sm:$0xff] }
  0x30   :  { %364 = vmatpush.msra.mxu1 %v176_v35  ;;  %v140_v40 = vld [vmem:[#allocation5 + $0x50] sm:$0xff]  ;;  %385 = vmatpush.msra.mxu2 %v206_v37  ;;  %v138_v44 = vld [vmem:[#allocation5 + $0x40] sm:$0xff]  ;;  %v181_v35 = vld [vmem:[#allocation5 + $0x198] sm:$0xff] }
  0x31   :  { %v204_v41 = vld [vmem:[#allocation5 + $0x250] sm:$0xff]  ;;  %405 = vmatpush.msra.mxu3 %v238_v38  ;;  %v202_v45 = vld [vmem:[#allocation5 + $0x240] sm:$0xff]  ;;  %346 = vmatpush.msra.mxu0 %v140_v40  ;;  %v145_v38 = vld [vmem:[#allocation5 + $0x78] sm:$0xff] }
  0x32   :  { %v236_v42 = vld [vmem:[#allocation5 + $0x350] sm:$0xff]  ;;  %365 = vmatpush.msra.mxu1 %v174_v39  ;;  %386 = vmatpush.msra.mxu2 %v204_v41  ;;  %v234_v46 = vld [vmem:[#allocation5 + $0x340] sm:$0xff]  ;;  %v179_v39 = vld [vmem:[#allocation5 + $0x188] sm:$0xff] }
  0x33   :  { %v172_v43 = vld [vmem:[#allocation5 + $0x150] sm:$0xff]  ;;  %v170_v47 = vld [vmem:[#allocation5 + $0x140] sm:$0xff]  ;;  %406 = vmatpush.msra.mxu3 %v236_v42  ;;  %347 = vmatpush.msra.mxu0 %v138_v44  ;;  %v143_v42 = vld [vmem:[#allocation5 + $0x68] sm:$0xff] }
  0x34   :  { %366 = vmatpush.msra.mxu1 %v172_v43  ;;  %v136_v48 = vld [vmem:[#allocation5 + $0x30] sm:$0xff]  ;;  %387 = vmatpush.msra.mxu2 %v202_v45  ;;  %v134_v52 = vld [vmem:[#allocation5 + $0x20] sm:$0xff]  ;;  %v177_v43 = vld [vmem:[#allocation5 + $0x178] sm:$0xff] }
  0x35   :  { %v200_v49 = vld [vmem:[#allocation5 + $0x230] sm:$0xff]  ;;  %407 = vmatpush.msra.mxu3 %v234_v46  ;;  %v198_v53 = vld [vmem:[#allocation5 + $0x220] sm:$0xff]  ;;  %348 = vmatpush.msra.mxu0 %v136_v48  ;;  %v141_v46 = vld [vmem:[#allocation5 + $0x58] sm:$0xff] }
  0x36   :  { %v232_v50 = vld [vmem:[#allocation5 + $0x330] sm:$0xff]  ;;  %367 = vmatpush.msra.mxu1 %v170_v47  ;;  %388 = vmatpush.msra.mxu2 %v200_v49  ;;  %v230_v54 = vld [vmem:[#allocation5 + $0x320] sm:$0xff]  ;;  %v175_v47 = vld [vmem:[#allocation5 + $0x168] sm:$0xff] }
  0x37   :  { %v168_v51 = vld [vmem:[#allocation5 + $0x130] sm:$0xff]  ;;  %v166_v55 = vld [vmem:[#allocation5 + $0x120] sm:$0xff]  ;;  %408 = vmatpush.msra.mxu3 %v232_v50  ;;  %349 = vmatpush.msra.mxu0 %v134_v52  ;;  %v139_v50 = vld [vmem:[#allocation5 + $0x48] sm:$0xff] }
  0x38   :  { %368 = vmatpush.msra.mxu1 %v168_v51  ;;  %v132_v56 = vld [vmem:[#allocation5 + $0x10] sm:$0xff]  ;;  %389 = vmatpush.msra.mxu2 %v198_v53  ;;  %v130_v60 = vld [vmem:[#allocation5] sm:$0xff]  ;;  %v173_v51 = vld [vmem:[#allocation5 + $0x158] sm:$0xff] }
  0x39   :  { %v196_v57 = vld [vmem:[#allocation5 + $0x210] sm:$0xff]  ;;  %409 = vmatpush.msra.mxu3 %v230_v54  ;;  %v194_v61 = vld [vmem:[#allocation5 + $0x200] sm:$0xff]  ;;  %350 = vmatpush.msra.mxu0 %v132_v56  ;;  %v137_v54 = vld [vmem:[#allocation5 + $0x38] sm:$0xff] }
  0x3a   :  { %v228_v58 = vld [vmem:[#allocation5 + $0x310] sm:$0xff]  ;;  %369 = vmatpush.msra.mxu1 %v166_v55  ;;  %390 = vmatpush.msra.mxu2 %v196_v57  ;;  %v226_v62 = vld [vmem:[#allocation5 + $0x300] sm:$0xff]  ;;  %v171_v55 = vld [vmem:[#allocation5 + $0x148] sm:$0xff] }
  0x3b   :  { %v164_v59 = vld [vmem:[#allocation5 + $0x110] sm:$0xff]  ;;  %410 = vmatpush.msra.mxu3 %v228_v58  ;;  %v162_v1 = vld [vmem:[#allocation5 + $0x100] sm:$0xff]  ;;  %351 = vmatpush.msra.mxu0 %v130_v60  ;;  %v135_v58 = vld [vmem:[#allocation5 + $0x28] sm:$0xff] }
  0x3c   :  { %v288_v63 = vld [vmem:[#allocation5 + $0x4f0] sm:$0xff]  ;;  %370 = vmatpush.msra.mxu1 %v164_v59  ;;  %391 = vmatpush.msra.mxu2 %v194_v61  ;;  %v286_v3 = vld [vmem:[#allocation5 + $0x4e0] sm:$0xff]  ;;  %v169_v59 = vld [vmem:[#allocation5 + $0x138] sm:$0xff] }
  0x3d   :  { %v324_v0 = vld [vmem:[#allocation5 + $0x610] sm:$0xff]  ;;  %411 = vmatpush.msra.mxu3 %v226_v62  ;;  %416 = vmatpush.msrb.mxu0 %v288_v63  ;;  %v322_v5 = vld [vmem:[#allocation5 + $0x600] sm:$0xff]  ;;  %v1096_v62 = vld [vmem:[#allocation2 + $0x30] sm:$0xff] }
  0x3e   :  { %v320_v4 = vld [vmem:[#allocation5 + $0x5f0] sm:$0xff]  ;;  %470 = vmatpush.msrb.mxu2 %v324_v0  ;;  %371 = vmatpush.msra.mxu1 %v162_v1  ;;  %v318_v10 = vld [vmem:[#allocation5 + $0x5e0] sm:$0xff]  ;;  %v133_v63 = vld [vmem:[#allocation5 + $0x18] sm:$0xff] }
  0x3f   :  { %476 = vmatpush.msrb.mxu3 %v161_v2  ;;  %417 = vmatpush.msrb.mxu0 %v286_v3  ;;  %v284_v9 = vld [vmem:[#allocation5 + $0x4d0] sm:$0xff]  ;;  %v1089_v12 = vld [vmem:[#allocation2 + $0x18] sm:$0xff]  ;;  %v167_v0 = vld [vmem:[#allocation5 + $0x128] sm:$0xff] }
  0x40   :  { %436 = vmatpush.msrb.mxu1 %v320_v4  ;;  %471 = vmatpush.msrb.mxu2 %v322_v5  ;;  %v282_v15 = vld [vmem:[#allocation5 + $0x4c0] sm:$0xff]  ;;  %v316_v16 = vld [vmem:[#allocation5 + $0x5d0] sm:$0xff]  ;;  %v1098_v3 = vld [vmem:[#allocation2 + $0x20] sm:$0xff] }
  0x41   :  { %392 = vmatmul.f32.vlgmr.msra.gmra.mxu2 %v1084_v6  ;;  %477 = vmatpush.msrb.mxu3 %v159_v7  ;;  %v1093_v18 = vld [vmem:[#allocation2 + $0x8] sm:$0xff]  ;;  %v314_v21 = vld [vmem:[#allocation5 + $0x5c0] sm:$0xff]  ;;  %v131_v4 = vld [vmem:[#allocation5 + $0x8] sm:$0xff] }
  0x42   :  { %496 = vmatpush.msra.mxu2 %v193_v8  ;;  %418 = vmatpush.msrb.mxu0 %v284_v9  ;;  %v280_v20 = vld [vmem:[#allocation5 + $0x4b0] sm:$0xff]  ;;  %v278_v24 = vld [vmem:[#allocation5 + $0x4a0] sm:$0xff]  ;;  %v165_v5 = vld [vmem:[#allocation5 + $0x118] sm:$0xff] }
  0x43   :  { %437 = vmatpush.msrb.mxu1 %v318_v10  ;;  %352 = vmatmul.f32.vlgmr.msra.gmra.mxu0 %v1086_v11  ;;  %v312_v25 = vld [vmem:[#allocation5 + $0x5b0] sm:$0xff]  ;;  %v310_v29 = vld [vmem:[#allocation5 + $0x5a0] sm:$0xff]  ;;  %v289_v8 = vld [vmem:[#allocation5 + $0x4f8] sm:$0xff] }
  0x44   :  { %412 = vmatmul.f32.vlgmr.msra.gmra.mxu3 %v1089_v12  ;;  %497 = vmatpush.msra.mxu2 %v191_v13  ;;  %v276_v28 = vld [vmem:[#allocation5 + $0x490] sm:$0xff]  ;;  %v274_v32 = vld [vmem:[#allocation5 + $0x480] sm:$0xff]  ;;  %v163_v10 = vld [vmem:[#allocation5 + $0x108] sm:$0xff] }
  0x45   :  { %478 = vmatpush.msrb.mxu3 %v157_v14  ;;  %419 = vmatpush.msrb.mxu0 %v282_v15  ;;  %v308_v33 = vld [vmem:[#allocation5 + $0x590] sm:$0xff]  ;;  %v306_v37 = vld [vmem:[#allocation5 + $0x580] sm:$0xff]  ;;  %v225_v13 = vld [vmem:[#allocation5 + $0x2f8] sm:$0xff] }
  0x46   :  { %438 = vmatpush.msrb.mxu1 %v316_v16  ;;  %498 = vmatpush.msra.mxu2 %v189_v17  ;;  %v272_v36 = vld [vmem:[#allocation5 + $0x470] sm:$0xff]  ;;  %v270_v40 = vld [vmem:[#allocation5 + $0x460] sm:$0xff]  ;;  %v287_v14 = vld [vmem:[#allocation5 + $0x4e8] sm:$0xff] }
  0x47   :  { %372 = vmatmul.f32.vlgmr.msra.gmra.mxu1 %v1093_v18  ;;  %479 = vmatpush.msrb.mxu3 %v155_v19  ;;  %v304_v41 = vld [vmem:[#allocation5 + $0x570] sm:$0xff]  ;;  %v302_v45 = vld [vmem:[#allocation5 + $0x560] sm:$0xff]  ;;  %v321_v15 = vld [vmem:[#allocation5 + $0x5f8] sm:$0xff] }
  0x48   :  { %420 = vmatpush.msrb.mxu0 %v280_v20  ;;  %439 = vmatpush.msrb.mxu1 %v314_v21  ;;  %v268_v44 = vld [vmem:[#allocation5 + $0x450] sm:$0xff]  ;;  %v266_v48 = vld [vmem:[#allocation5 + $0x440] sm:$0xff]  ;;  %v257_v16 = vld [vmem:[#allocation5 + $0x3f8] sm:$0xff] }
  0x49   :  { %480 = vmatpush.msrb.mxu3 %v153_v22  ;;  %499 = vmatpush.msra.mxu2 %v187_v23  ;;  %v300_v49 = vld [vmem:[#allocation5 + $0x550] sm:$0xff]  ;;  %v298_v53 = vld [vmem:[#allocation5 + $0x540] sm:$0xff]  ;;  %v223_v17 = vld [vmem:[#allocation5 + $0x2e8] sm:$0xff] }
  0x4a   :  { %421 = vmatpush.msrb.mxu0 %v278_v24  ;;  %440 = vmatpush.msrb.mxu1 %v312_v25  ;;  %v264_v52 = vld [vmem:[#allocation5 + $0x430] sm:$0xff]  ;;  %v262_v56 = vld [vmem:[#allocation5 + $0x420] sm:$0xff]  ;;  %v285_v19 = vld [vmem:[#allocation5 + $0x4d8] sm:$0xff] }
  0x4b   :  { %481 = vmatpush.msrb.mxu3 %v151_v26  ;;  %500 = vmatpush.msra.mxu2 %v185_v27  ;;  %v296_v57 = vld [vmem:[#allocation5 + $0x530] sm:$0xff]  ;;  %v294_v61 = vld [vmem:[#allocation5 + $0x520] sm:$0xff]  ;;  %v319_v20 = vld [vmem:[#allocation5 + $0x5e8] sm:$0xff] }
  0x4c   :  { %422 = vmatpush.msrb.mxu0 %v276_v28  ;;  %441 = vmatpush.msrb.mxu1 %v310_v29  ;;  %v260_v60 = vld [vmem:[#allocation5 + $0x410] sm:$0xff]  ;;  %v258_v1 = vld [vmem:[#allocation5 + $0x400] sm:$0xff]  ;;  %v255_v21 = vld [vmem:[#allocation5 + $0x3e8] sm:$0xff] }
  0x4d   :  { %482 = vmatpush.msrb.mxu3 %v149_v30  ;;  %501 = vmatpush.msra.mxu2 %v183_v31  ;;  %v292_v2 = vld [vmem:[#allocation5 + $0x510] sm:$0xff]  ;;  %v290_v7 = vld [vmem:[#allocation5 + $0x500] sm:$0xff]  ;;  %v221_v22 = vld [vmem:[#allocation5 + $0x2d8] sm:$0xff] }
  0x4e   :  { %423 = vmatpush.msrb.mxu0 %v274_v32  ;;  %442 = vmatpush.msrb.mxu1 %v308_v33  ;;  %v1103_v9 = vld [vmem:[#allocation2 + $0x28] sm:$0xff]  ;;  %v283_v23 = vld [vmem:[#allocation5 + $0x4c8] sm:$0xff]  ;;  %v317_v24 = vld [vmem:[#allocation5 + $0x5d8] sm:$0xff] }
  0x4f   :  { %483 = vmatpush.msrb.mxu3 %v147_v34  ;;  %502 = vmatpush.msra.mxu2 %v181_v35  ;;  %v253_v25 = vld [vmem:[#allocation5 + $0x3d8] sm:$0xff]  ;;  %v219_v26 = vld [vmem:[#allocation5 + $0x2c8] sm:$0xff] }
  0x50   :  { %424 = vmatpush.msrb.mxu0 %v272_v36  ;;  %443 = vmatpush.msrb.mxu1 %v306_v37  ;;  %v281_v27 = vld [vmem:[#allocation5 + $0x4b8] sm:$0xff]  ;;  %v315_v28 = vld [vmem:[#allocation5 + $0x5c8] sm:$0xff] }
  0x51   :  { %484 = vmatpush.msrb.mxu3 %v145_v38  ;;  %503 = vmatpush.msra.mxu2 %v179_v39  ;;  %v251_v29 = vld [vmem:[#allocation5 + $0x3c8] sm:$0xff]  ;;  %v217_v30 = vld [vmem:[#allocation5 + $0x2b8] sm:$0xff] }
  0x52   :  { %425 = vmatpush.msrb.mxu0 %v270_v40  ;;  %444 = vmatpush.msrb.mxu1 %v304_v41  ;;  %v279_v31 = vld [vmem:[#allocation5 + $0x4a8] sm:$0xff]  ;;  %v313_v32 = vld [vmem:[#allocation5 + $0x5b8] sm:$0xff] }
  0x53   :  { %485 = vmatpush.msrb.mxu3 %v143_v42  ;;  %504 = vmatpush.msra.mxu2 %v177_v43  ;;  %v249_v33 = vld [vmem:[#allocation5 + $0x3b8] sm:$0xff]  ;;  %v215_v34 = vld [vmem:[#allocation5 + $0x2a8] sm:$0xff] }
  0x54   :  { %426 = vmatpush.msrb.mxu0 %v268_v44  ;;  %445 = vmatpush.msrb.mxu1 %v302_v45  ;;  %v277_v35 = vld [vmem:[#allocation5 + $0x498] sm:$0xff]  ;;  %v311_v36 = vld [vmem:[#allocation5 + $0x5a8] sm:$0xff] }
  0x55   :  { %486 = vmatpush.msrb.mxu3 %v141_v46  ;;  %505 = vmatpush.msra.mxu2 %v175_v47  ;;  %v247_v37 = vld [vmem:[#allocation5 + $0x3a8] sm:$0xff]  ;;  %v213_v38 = vld [vmem:[#allocation5 + $0x298] sm:$0xff] }
  0x56   :  { %427 = vmatpush.msrb.mxu0 %v266_v48  ;;  %446 = vmatpush.msrb.mxu1 %v300_v49  ;;  %v275_v39 = vld [vmem:[#allocation5 + $0x488] sm:$0xff]  ;;  %v309_v40 = vld [vmem:[#allocation5 + $0x598] sm:$0xff] }
  0x57   :  { %487 = vmatpush.msrb.mxu3 %v139_v50  ;;  %506 = vmatpush.msra.mxu2 %v173_v51  ;;  %v245_v41 = vld [vmem:[#allocation5 + $0x398] sm:$0xff]  ;;  %v211_v42 = vld [vmem:[#allocation5 + $0x288] sm:$0xff] }
  0x58   :  { %428 = vmatpush.msrb.mxu0 %v264_v52  ;;  %447 = vmatpush.msrb.mxu1 %v298_v53  ;;  %v273_v43 = vld [vmem:[#allocation5 + $0x478] sm:$0xff]  ;;  %v307_v44 = vld [vmem:[#allocation5 + $0x588] sm:$0xff] }
  0x59   :  { %488 = vmatpush.msrb.mxu3 %v137_v54  ;;  %507 = vmatpush.msra.mxu2 %v171_v55  ;;  %v243_v45 = vld [vmem:[#allocation5 + $0x388] sm:$0xff]  ;;  %v209_v46 = vld [vmem:[#allocation5 + $0x278] sm:$0xff] }
  0x5a   :  { %429 = vmatpush.msrb.mxu0 %v262_v56  ;;  %448 = vmatpush.msrb.mxu1 %v296_v57  ;;  %v271_v47 = vld [vmem:[#allocation5 + $0x468] sm:$0xff]  ;;  %v305_v48 = vld [vmem:[#allocation5 + $0x578] sm:$0xff] }
  0x5b   :  { %489 = vmatpush.msrb.mxu3 %v135_v58  ;;  %508 = vmatpush.msra.mxu2 %v169_v59  ;;  %v241_v49 = vld [vmem:[#allocation5 + $0x378] sm:$0xff]  ;;  %v207_v50 = vld [vmem:[#allocation5 + $0x268] sm:$0xff] }
  0x5c   :  { %430 = vmatpush.msrb.mxu0 %v260_v60  ;;  %449 = vmatpush.msrb.mxu1 %v294_v61  ;;  %v269_v51 = vld [vmem:[#allocation5 + $0x458] sm:$0xff]  ;;  %v303_v52 = vld [vmem:[#allocation5 + $0x568] sm:$0xff] }
  0x5d   :  { %807 = vmatmul.msk.f32.vlgmr.msrb.gmra.mxu2 %vm332_vm0, %v1096_v62  ;;  %490 = vmatpush.msrb.mxu3 %v133_v63  ;;  %v239_v53 = vld [vmem:[#allocation5 + $0x368] sm:$0xff]  ;;  %v205_v54 = vld [vmem:[#allocation5 + $0x258] sm:$0xff] }
  0x5e   :  { %509 = vmatpush.msra.mxu2 %v167_v0  ;;  %431 = vmatpush.msrb.mxu0 %v258_v1  ;;  %v267_v55 = vld [vmem:[#allocation5 + $0x448] sm:$0xff]  ;;  %v301_v56 = vld [vmem:[#allocation5 + $0x558] sm:$0xff] }
  0x5f   :  { %450 = vmatpush.msrb.mxu1 %v292_v2  ;;  %432 = vmatmul.f32.vlgmr.msrb.gmra.mxu0 %v1098_v3  ;;  %v203_v57 = vld [vmem:[#allocation5 + $0x248] sm:$0xff]  ;;  %v237_v58 = vld [vmem:[#allocation5 + $0x358] sm:$0xff] }
  0x60   :  { %491 = vmatpush.msrb.mxu3 %v131_v4  ;;  %510 = vmatpush.msra.mxu2 %v165_v5  ;;  %v265_v59 = vld [vmem:[#allocation5 + $0x438] sm:$0xff]  ;;  %v299_v60 = vld [vmem:[#allocation5 + $0x548] sm:$0xff] }
  0x61   :  { %451 = vmatpush.msrb.mxu1 %v290_v7  ;;  %516 = vmatpush.msra.mxu0 %v225_v13  ;;  %v201_v61 = vld [vmem:[#allocation5 + $0x238] sm:$0xff]  ;;  %v235_v63 = vld [vmem:[#allocation5 + $0x348] sm:$0xff] }
  0x62   :  { %556 = vmatpush.msra.mxu3 %v289_v8  ;;  %452 = vmatmul.f32.vlgmr.msrb.gmra.mxu1 %v1103_v9  ;;  %v263_v0 = vld [vmem:[#allocation5 + $0x428] sm:$0xff]  ;;  %v297_v1 = vld [vmem:[#allocation5 + $0x538] sm:$0xff] }
  0x63   :  { %511 = vmatpush.msra.mxu2 %v163_v10  ;;  %536 = vmatpush.msra.mxu1 %v257_v16  ;;  %v199_v2 = vld [vmem:[#allocation5 + $0x228] sm:$0xff]  ;;  %v233_v4 = vld [vmem:[#allocation5 + $0x338] sm:$0xff] }
  0x64   :  { %557 = vmatpush.msra.mxu3 %v287_v14  ;;  %517 = vmatpush.msra.mxu0 %v223_v17  ;;  %v261_v5 = vld [vmem:[#allocation5 + $0x418] sm:$0xff]  ;;  %v295_v7 = vld [vmem:[#allocation5 + $0x528] sm:$0xff] }
  0x65   :  { %576 = vmatpush.msrb.mxu2 %v321_v15  ;;  %537 = vmatpush.msra.mxu1 %v255_v21  ;;  %v197_v8 = vld [vmem:[#allocation5 + $0x218] sm:$0xff]  ;;  %v259_v10 = vld [vmem:[#allocation5 + $0x408] sm:$0xff] }
  0x66   :  { %558 = vmatpush.msra.mxu3 %v285_v19  ;;  %518 = vmatpush.msra.mxu0 %v221_v22  ;;  %v293_v13 = vld [vmem:[#allocation5 + $0x518] sm:$0xff]  ;;  %v195_v14 = vld [vmem:[#allocation5 + $0x208] sm:$0xff] }
  0x67   :  { %577 = vmatpush.msrb.mxu2 %v319_v20  ;;  %538 = vmatpush.msra.mxu1 %v253_v25  ;;  %v229_v15 = vld [vmem:[#allocation5 + $0x318] sm:$0xff]  ;;  %v227_v17 = vld [vmem:[#allocation5 + $0x308] sm:$0xff] }
  0x68   :  { %559 = vmatpush.msra.mxu3 %v283_v23  ;;  %519 = vmatpush.msra.mxu0 %v219_v26  ;;  %v325_v16 = vld [vmem:[#allocation5 + $0x618] sm:$0xff]  ;;  %v323_v19 = vld [vmem:[#allocation5 + $0x608] sm:$0xff] }
  0x69   :  { %578 = vmatpush.msrb.mxu2 %v317_v24  ;;  %539 = vmatpush.msra.mxu1 %v251_v29  ;;  %v633_v20 = vld [vmem:[#allocation8 + $0x78] sm:$0xff]  ;;  %v631_v21 = vld [vmem:[#allocation8 + $0x68] sm:$0xff]  ;;  %v630_v22 = vld [vmem:[#allocation8 + $0x60] sm:$0xff] }
  0x6a   :  { %560 = vmatpush.msra.mxu3 %v281_v27  ;;  %520 = vmatpush.msra.mxu0 %v217_v30  ;;  %v629_v23 = vld [vmem:[#allocation8 + $0x58] sm:$0xff]  ;;  %v626_v24 = vld [vmem:[#allocation8 + $0x40] sm:$0xff]  ;;  %v624_v25 = vld [vmem:[#allocation8 + $0x30] sm:$0xff] }
  0x6b   :  { %579 = vmatpush.msrb.mxu2 %v315_v28  ;;  %540 = vmatpush.msra.mxu1 %v249_v33  ;;  %v622_v26 = vld [vmem:[#allocation8 + $0x20] sm:$0xff]  ;;  %v621_v27 = vld [vmem:[#allocation8 + $0x18] sm:$0xff]  ;;  %v620_v28 = vld [vmem:[#allocation8 + $0x10] sm:$0xff] }
  0x6c   :  { %561 = vmatpush.msra.mxu3 %v279_v31  ;;  %521 = vmatpush.msra.mxu0 %v215_v34  ;;  %v619_v29 = vld [vmem:[#allocation8 + $0x8] sm:$0xff]  ;;  %v618_v30 = vld [vmem:[#allocation8] sm:$0xff]  ;;  %v649_v31 = vld [vmem:[#allocation8 + $0xf8] sm:$0xff] }
  0x6d   :  { %580 = vmatpush.msrb.mxu2 %v313_v32  ;;  %541 = vmatpush.msra.mxu1 %v247_v37  ;;  %v648_v32 = vld [vmem:[#allocation8 + $0xf0] sm:$0xff]  ;;  %v326_v33 = vld [vmem:[#allocation7] sm:$0x3]  ;;  %v647_v34 = vld [vmem:[#allocation8 + $0xe8] sm:$0xff] }
  0x6e   :  { %562 = vmatpush.msra.mxu3 %v277_v35  ;;  %522 = vmatpush.msra.mxu0 %v213_v38  ;;  %v646_v35 = vld [vmem:[#allocation8 + $0xe0] sm:$0xff]  ;;  %v645_v38 = vld [vmem:[#allocation8 + $0xd8] sm:$0xff] }
  0x6f   :  { %581 = vmatpush.msrb.mxu2 %v311_v36  ;;  %542 = vmatpush.msra.mxu1 %v245_v41  ;;  %v328_v36 = vperm.slane %v326_v33, 0 }
  0x70   :  { %563 = vmatpush.msra.mxu3 %v275_v39  ;;  %523 = vmatpush.msra.mxu0 %v211_v42  ;;  %v644_v39 = vld [vmem:[#allocation8 + $0xd0] sm:$0xff]  ;;  %v643_v42 = vld [vmem:[#allocation8 + $0xc8] sm:$0xff] }
  0x71   :  { %582 = vmatpush.msrb.mxu2 %v309_v40  ;;  %543 = vmatpush.msra.mxu1 %v243_v45 }
  0x72   :  { %564 = vmatpush.msra.mxu3 %v273_v43  ;;  %524 = vmatpush.msra.mxu0 %v209_v46 }
  0x73   :  { %583 = vmatpush.msrb.mxu2 %v307_v44  ;;  %544 = vmatpush.msra.mxu1 %v241_v49  ;;  %v642_v49 = vld [vmem:[#allocation8 + $0xc0] sm:$0xff] }
  0x74   :  { %565 = vmatpush.msra.mxu3 %v271_v47  ;;  %525 = vmatpush.msra.mxu0 %v207_v50 }
  0x75   :  { %584 = vmatpush.msrb.mxu2 %v305_v48  ;;  %545 = vmatpush.msra.mxu1 %v239_v53 }
  0x76   :  { %566 = vmatpush.msra.mxu3 %v269_v51  ;;  %526 = vmatpush.msra.mxu0 %v205_v54  ;;  %v641_v51 = vld [vmem:[#allocation8 + $0xb8] sm:$0xff] }
  0x77   :  { %585 = vmatpush.msrb.mxu2 %v303_v52  ;;  %492 = vmatmul.f32.vlgmr.msrb.gmra.mxu3 %v1086_v11  ;;  %v231_v11 = vld [vmem:[#allocation5 + $0x328] sm:$0xff] }
  0x78   :  { %567 = vmatpush.msra.mxu3 %v267_v55  ;;  %527 = vmatpush.msra.mxu0 %v203_v57  ;;  %v640_v55 = vld [vmem:[#allocation8 + $0xb0] sm:$0xff]  ;;  %v639_v57 = vld [vmem:[#allocation8 + $0xa8] sm:$0xff] }
  0x79   :  { %586 = vmatpush.msrb.mxu2 %v301_v56  ;;  %546 = vmatpush.msra.mxu1 %v237_v58 }
  0x7a   :  { %568 = vmatpush.msra.mxu3 %v265_v59  ;;  %512 = vmatmul.f32.vlgmr.msra.gmra.mxu2 %v1093_v18  ;;  %v291_v18 = vld [vmem:[#allocation5 + $0x508] sm:$0xff] }
  0x7b   :  { %587 = vmatpush.msrb.mxu2 %v299_v60  ;;  %528 = vmatpush.msra.mxu0 %v201_v61  ;;  %v638_v59 = vld [vmem:[#allocation8 + $0xa0] sm:$0xff]  ;;  %v637_v60 = vld [vmem:[#allocation8 + $0x98] sm:$0xff]  ;;  %v636_v61 = vld [vmem:[#allocation8 + $0x90] sm:$0xff] }
  0x7c   :  { %547 = vmatpush.msra.mxu1 %v235_v63  ;;  %569 = vmatpush.msra.mxu3 %v263_v0  ;;  %v635_v63 = vld [vmem:[#allocation8 + $0x88] sm:$0xff]  ;;  %v634_v0 = vld [vmem:[#allocation8 + $0x80] sm:$0xff] }
  0x7d   :  { %588 = vmatpush.msrb.mxu2 %v297_v1  ;;  %529 = vmatpush.msra.mxu0 %v199_v2  ;;  %v329_v1 = vperm.slane %v326_v33, 1  ;;  %v750_v33 = vld [vmem:[#allocation11 + $0x70] sm:$0xff] }
  0x7e   :  { %548 = vmatpush.msra.mxu1 %v233_v4  ;;  %570 = vmatpush.msra.mxu3 %v261_v5 }
  0x7f   :  { %589 = vmatpush.msrb.mxu2 %v295_v7  ;;  %530 = vmatpush.msra.mxu0 %v197_v8 }
  0x80   :  { %549 = vmatpush.msra.mxu1 %v231_v11  ;;  %571 = vmatpush.msra.mxu3 %v259_v10 }
  0x81   :  { %590 = vmatpush.msrb.mxu2 %v293_v13  ;;  %572 = vmatmul.f32.vlgmr.msra.gmra.mxu3 %v1098_v3  ;;  %v632_v3 = vld [vmem:[#allocation8 + $0x70] sm:$0xff] }
  0x82   :  { %531 = vmatpush.msra.mxu0 %v195_v14  ;;  %550 = vmatpush.msra.mxu1 %v229_v15 }
  0x83   :  { %591 = vmatpush.msrb.mxu2 %v291_v18  ;;  %532 = vmatmul.f32.vlgmr.msra.gmra.mxu0 %v1084_v6  ;;  %v628_v6 = vld [vmem:[#allocation8 + $0x50] sm:$0xff] }
  0x84   :  { %592 = vmatmul.f32.vlgmr.msrb.gmra.mxu2 %v1103_v9  ;;  %610 = vmatpush.msrb.mxu0 %v325_v16  ;;  %v627_v9 = vld [vmem:[#allocation8 + $0x48] sm:$0xff] }
  0x85   :  { %551 = vmatpush.msra.mxu1 %v227_v17  ;;  %674 = vmatpush.msrb.mxu3 %v649_v31  ;;  %v695_v31 = vld [vmem:[#allocation10] sm:$0xff] }
  0x86   :  { %552 = vmatmul.f32.vlgmr.msra.gmra.mxu1 %v1089_v12  ;;  %611 = vmatpush.msrb.mxu0 %v323_v19  ;;  %v625_v12 = vld [vmem:[#allocation8 + $0x38] sm:$0xff] }
  0x87   :  { %654 = vmatpush.msrb.mxu1 %v633_v20  ;;  %675 = vmatpush.msrb.mxu3 %v648_v32  ;;  %v751_v32 = vld [vmem:[#allocation11 + $0x78] sm:$0xff] }
  0x88   :  { %756 = vmatpush.msra.mxu2 %v751_v32 }
  0x89   :  { %655 = vmatpush.msrb.mxu1 %v632_v3  ;;  %676 = vmatpush.msrb.mxu3 %v647_v34  ;;  %v710_v3 = vld [vmem:[#allocation10 + $0x78] sm:$0xff]  ;;  %v749_v34 = vld [vmem:[#allocation11 + $0x68] sm:$0xff] }
  0x8a   :  { %715 = vmatpush.msra.mxu0 %v710_v3  ;;  %757 = vmatpush.msra.mxu2 %v750_v33 }
  0x8b   :  { %808 = vmatmul.msk.f32.vlgmr.msrb.gmra.mxu0 %vm332_vm0, %v1096_v62  ;;  %656 = vmatpush.msrb.mxu1 %v631_v21  ;;  %v623_v62 = vld [vmem:[#allocation8 + $0x28] sm:$0xff]  ;;  %v709_v21 = vld [vmem:[#allocation10 + $0x70] sm:$0xff] }
  0x8c   :  { %677 = vmatpush.msrb.mxu3 %v646_v35  ;;  %716 = vmatpush.msra.mxu0 %v709_v21  ;;  %v748_v35 = vld [vmem:[#allocation11 + $0x60] sm:$0xff] }
  0x8d   :  { %657 = vmatpush.msrb.mxu1 %v630_v22  ;;  %v708_v22 = vld [vmem:[#allocation10 + $0x68] sm:$0xff]  ;;  %758 = vmatpush.msra.mxu2 %v749_v34 }
  0x8e   :  { %678 = vmatpush.msrb.mxu3 %v645_v38  ;;  %717 = vmatpush.msra.mxu0 %v708_v22  ;;  %v745_v38 = vld [vmem:[#allocation11 + $0x48] sm:$0xff] }
  0x8f   :  { %658 = vmatpush.msrb.mxu1 %v629_v23  ;;  %v707_v23 = vld [vmem:[#allocation10 + $0x60] sm:$0xff]  ;;  %759 = vmatpush.msra.mxu2 %v748_v35 }
  0x90   :  { %679 = vmatpush.msrb.mxu3 %v644_v39  ;;  %718 = vmatpush.msra.mxu0 %v707_v23  ;;  %v744_v39 = vld [vmem:[#allocation11 + $0x40] sm:$0xff] }
  0x91   :  { %659 = vmatpush.msrb.mxu1 %v628_v6  ;;  %v706_v6 = vld [vmem:[#allocation10 + $0x58] sm:$0xff] }
  0x92   :  { %680 = vmatpush.msrb.mxu3 %v643_v42  ;;  %719 = vmatpush.msra.mxu0 %v706_v6  ;;  %v741_v42 = vld [vmem:[#allocation11 + $0x28] sm:$0xff] }
  0x93   :  { %660 = vmatpush.msrb.mxu1 %v627_v9  ;;  %v705_v9 = vld [vmem:[#allocation10 + $0x50] sm:$0xff] }
  0x94   :  { %681 = vmatpush.msrb.mxu3 %v642_v49  ;;  %720 = vmatpush.msra.mxu0 %v705_v9 }
  0x95   :  { %661 = vmatpush.msrb.mxu1 %v626_v24  ;;  %v704_v24 = vld [vmem:[#allocation10 + $0x48] sm:$0xff] }
  0x96   :  { %682 = vmatpush.msrb.mxu3 %v641_v51  ;;  %721 = vmatpush.msra.mxu0 %v704_v24  ;;  %v738_v51 = vld [vmem:[#allocation11 + $0x10] sm:$0xff] }
  0x97   :  { %662 = vmatpush.msrb.mxu1 %v625_v12  ;;  %v703_v12 = vld [vmem:[#allocation10 + $0x40] sm:$0xff] }
  0x98   :  { %683 = vmatpush.msrb.mxu3 %v640_v55  ;;  %722 = vmatpush.msra.mxu0 %v703_v12 }
  0x99   :  { %663 = vmatpush.msrb.mxu1 %v624_v25  ;;  %v702_v25 = vld [vmem:[#allocation10 + $0x38] sm:$0xff] }
  0x9a   :  { %684 = vmatpush.msrb.mxu3 %v639_v57  ;;  %723 = vmatpush.msra.mxu0 %v702_v25 }
  0x9b   :  { %664 = vmatpush.msrb.mxu1 %v623_v62  ;;  %v701_v62 = vld [vmem:[#allocation10 + $0x30] sm:$0xff] }
  0x9c   :  { %685 = vmatpush.msrb.mxu3 %v638_v59  ;;  %724 = vmatpush.msra.mxu0 %v701_v62 }
  0x9d   :  { %665 = vmatpush.msrb.mxu1 %v622_v26  ;;  %v700_v26 = vld [vmem:[#allocation10 + $0x28] sm:$0xff] }
  0x9e   :  { %686 = vmatpush.msrb.mxu3 %v637_v60  ;;  %725 = vmatpush.msra.mxu0 %v700_v26 }
  0x9f   :  { %666 = vmatpush.msrb.mxu1 %v621_v27  ;;  %v699_v27 = vld [vmem:[#allocation10 + $0x20] sm:$0xff] }
  0xa0   :  { %687 = vmatpush.msrb.mxu3 %v636_v61  ;;  %726 = vmatpush.msra.mxu0 %v699_v27 }
  0xa1   :  { %667 = vmatpush.msrb.mxu1 %v620_v28  ;;  %v698_v28 = vld [vmem:[#allocation10 + $0x18] sm:$0xff] }
  0xa2   :  { %688 = vmatpush.msrb.mxu3 %v635_v63  ;;  %727 = vmatpush.msra.mxu0 %v698_v28 }
  0xa3   :  { %668 = vmatpush.msrb.mxu1 %v619_v29  ;;  %v697_v29 = vld [vmem:[#allocation10 + $0x10] sm:$0xff] }
  0xa4   :  { %689 = vmatpush.msrb.mxu3 %v634_v0  ;;  %728 = vmatpush.msra.mxu0 %v697_v29 }
  0xa5   :  { %669 = vmatpush.msrb.mxu1 %v618_v30  ;;  %v696_v30 = vld [vmem:[#allocation10 + $0x8] sm:$0xff] }
  0xa6   :  { %729 = vmatpush.msra.mxu0 %v696_v30 }
  0xa8   :  { %730 = vmatpush.msra.mxu0 %v695_v31 }
  0xc0   :  { %v353_v37 = vpop.f32.mrf.mxu0 }
  0xc1   :  { %v354_v40 = vadd.f32 %v353_v37, %v328_v36  ;;  %v747_v36 = vld [vmem:[#allocation11 + $0x58] sm:$0xff]  ;;  %v746_v37 = vld [vmem:[#allocation11 + $0x50] sm:$0xff] }
  0xc2   :  { %760 = vmatpush.msra.mxu2 %v747_v36 }
  0xc4   :  { %v373_v41 = vpop.f32.mrf.mxu1  ;;  %v393_v44 = vpop.f32.mrf.mxu2  ;;  %761 = vmatpush.msra.mxu2 %v746_v37 }
  0xc5   :  { %v374_v43 = vadd.f32 %v373_v41, %v354_v40  ;;  %v743_v40 = vld [vmem:[#allocation11 + $0x38] sm:$0xff]  ;;  %v742_v41 = vld [vmem:[#allocation11 + $0x30] sm:$0xff] }
  0xc6   :  { %762 = vmatpush.msra.mxu2 %v745_v38 }
  0xc7   :  { %v394_v45 = vadd.f32 %v393_v44, %v374_v43  ;;  %v413_v46 = vpop.f32.mrf.mxu3  ;;  %v740_v43 = vld [vmem:[#allocation11 + $0x20] sm:$0xff] }
  0xc8   :  { %763 = vmatpush.msra.mxu2 %v744_v39  ;;  %v820_v44 = vld [vmem:[%s1130_s4] ss:$0 sm:$0xff] }
  0xc9   :  { %v414_v47 = vadd.f32 %v413_v46, %v394_v45  ;;  %v739_v45 = vld [vmem:[#allocation11 + $0x18] sm:$0xff] }
  0xca   :  { %764 = vmatpush.msra.mxu2 %v743_v40 }
  0xcc   :  { %765 = vmatpush.msra.mxu2 %v742_v41 }
  0xce   :  { %766 = vmatpush.msra.mxu2 %v741_v42 }
  0xd0   :  { %767 = vmatpush.msra.mxu2 %v740_v43 }
  0xd2   :  { %768 = vmatpush.msra.mxu2 %v739_v45 }
  0xd4   :  { %769 = vmatpush.msra.mxu2 %v738_v51 }
  0xdc   :  { %v433_v48 = vpop.f32.mrf.mxu0 }
  0xdd   :  { %v434_v50 = vadd.f32 %v433_v48, %v414_v47 }
  0xdf   :  { %v453_v52 = vpop.f32.mrf.mxu1 }
  0xe0   :  { %v454_v53 = vadd.f32 %v453_v52, %v434_v50  ;;  %v473_v54 = vpop.f32.mrf.mxu2  ;;  %v737_v52 = vld [vmem:[#allocation11 + $0x8] sm:$0xff] }
  0xe1   :  { %770 = vmatpush.msra.mxu2 %v737_v52 }
  0xe2   :  { %v474_v56 = vadd.f32 %v473_v54, %v454_v53  ;;  %v736_v53 = vld [vmem:[#allocation11] sm:$0xff] }
  0xe3   :  { %771 = vmatpush.msra.mxu2 %v736_v53  ;;  %v821_v54 = vld [vmem:[%s1132_s6] ss:$0 sm:$0xff]  ;;  %s1015_s6 = smov [#allocation13]  }
  0xe4   :  { %v616_v58 = vmax.f32 %v474_v56, 0.0  ;;  %s792_s21 = sshll.u32 %s1015_s6, 4  ;;  %s793_s21 = int_to_ptr.vmem [resolvable:$true] %s792_s21 }
  0xe6   :  { %670 = vmatmul.f32.vlgmr.msrb.gmra.mxu1 %v616_v58  ;;  %v822_v58 = vld [vmem:[%s1134_s8] ss:$0 sm:$0xff] }
  0xfa   :  { %v493_v2 = vpop.f32.mrf.mxu3 }
  0xfb   :  { %v494_v4 = vadd.f32 %v493_v2, %v329_v1 }
  0xfd   :  { %v513_v5 = vpop.f32.mrf.mxu2 }
  0xfe   :  { %v514_v7 = vadd.f32 %v513_v5, %v494_v4 }
 0x100   :  { %v533_v8 = vpop.f32.mrf.mxu0 }
 0x101   :  { %v534_v11 = vadd.f32 %v533_v8, %v514_v7 }
 0x103   :  { %v553_v10 = vpop.f32.mrf.mxu1 }
 0x104   :  { %v554_v13 = vadd.f32 %v553_v10, %v534_v11  ;;  %v573_v14 = vpop.f32.mrf.mxu3 }
 0x106   :  { %v574_v15 = vadd.f32 %v573_v14, %v554_v13 }
 0x107   :  { %v593_v18 = vpop.f32.mrf.mxu2 }
 0x108   :  { %v594_v16 = vadd.f32 %v593_v18, %v574_v15  ;;  %v613_v17 = vpop.f32.mrf.mxu0 }
 0x10a   :  { %v614_v19 = vadd.f32 %v613_v17, %v594_v16 }
 0x10c   :  { %v617_v20 = vmax.f32 %v614_v19, 0.0 }
 0x10e   :  { %690 = vmatmul.f32.vlgmr.msrb.gmra.mxu3 %v617_v20 }
 0x163   :  { %v671_v46 = vpop.f32.mrf.mxu1 }
 0x164   :  { %v672_v47 = vadd.f32 %v820_v44, %v671_v46 }
 0x191   :  { %v691_v48 = vpop.f32.mrf.mxu3 }
 0x192   :  { %v692_v49 = vadd.f32 %v691_v48, %v672_v47 }
 0x194   :  { %v694_v50 = vmax.f32 %v692_v49, 0.0 }
 0x196   :  { %731 = vmatmul.f32.vlgmr.msra.gmra.mxu0 %v694_v50 }
 0x213   :  { %v732_v55 = vpop.f32.mrf.mxu0 }
 0x214   :  { %v733_v56 = vadd.f32 %v821_v54, %v732_v55 }
 0x216   :  { %v735_v57 = vmax.f32 %v733_v56, 0.0 }
 0x218   :  { %772 = vmatmul.f32.vlgmr.msra.gmra.mxu2 %v735_v57 }
 0x29b   :  { %v773_v59 = vpop.f32.mrf.mxu2 }
 0x29c   :  { %v774_v60 = vadd.f32 %v822_v58, %v773_v59 }
 0x29e   :  { %776 = vmax.xlane.f32.xlu0 %v774_v60 }
 0x311   :  { %v777_v61 = vpop.xlane.xlu0 %776 }
 0x312   :  { %v778_v63 = vsub.f32 %v774_v60, %v777_v61 }
 0x314   :  { %v779_v0 = vmul.f32 1.442695, %v778_v63 }
 0x316   :  { %823 = vpow2.f32 %v779_v0 }
 0x31c   :  { %v824_v1 = vpop.eup %823 }
 0x31d   :  { %781 = vadd.xlane.f32.xlu0 %v824_v1 }
 0x390   :  { %v782_v2 = vpop.xlane.xlu0 %781 }
 0x391   :  { %825 = vlog2.f32 %v782_v2 }
 0x397   :  { %v826_v4 = vpop.eup %825 }
 0x398   :  { %v784_v5 = vmul.f32 0.6931472, %v826_v4 }
 0x39a   :  { %v785_v7 = vsub.f32 %v778_v63, %v784_v5 }
 0x39c   :  { %786 = vst [vmem:[#allocation13] sm:$0xff] %v785_v7 }
 0x39d   :  { %797 = dma.vmem_to_hbm [thread:$0]  %s793_s21, 128, %s795_s23, [#allocation4]  }
 0x39e   :  { %1003 = dma.done.wait [#allocation4], 128  }
 0x39f   :  { %1004 = vsyncadd [#allocation4], 4294967168 }
 0x3a0   :  { %802 = vsyncpa [#allocation3], 1 }
 0x3a1   :  { %803 = vsyncpa [#allocation6], 1 }
 0x3a2   :  { %804 = vsyncpa [#allocation9], 1 }
 0x3a3   :  { %805 = vsyncpa [#allocation12], 1 }
 0x3a4   :  { %806 = vsyncpa [#allocation4], 1 }

</bundles_post_ra>
